<compile_context>
chip_gen: v7x
topology: tpu7x:2x2x1
jax: 0.10.0
libtpu: 0.0.40
codegen_flags: <defaults>
</compile_context>

<pallas_src>
import functools
import math

import jax
import jax.numpy as jnp
from jax.experimental import pallas as pl
from jax.experimental.pallas import tpu as pltpu


def _round_up(a, m):
    return ((a + m - 1) // m) * m


def _head_kernel(x_ref, e_ref, mod_ref, w_ref, b_ref, o_ref, *, eps, inv_c):
    # x_ref:   (1, tile_L, C)  f32
    # e_ref:   (1, 1, C)       f32
    # mod_ref: (1, 2, C)       f32
    # w_ref:   (C, O)          bf16 (pre-cast / pre-transposed in wrapper)
    # b_ref:   (1, O)          f32
    # o_ref:   (1, tile_L, O)  bf16
    xf = x_ref[0].astype(jnp.float32)                              # (tile_L, C)

    # LayerNorm (no affine), biased variance, f32 math.
    mean = jnp.sum(xf, axis=-1, keepdims=True) * inv_c
    xc = xf - mean
    var = jnp.sum(xc * xc, axis=-1, keepdims=True) * inv_c
    y = (xc * jax.lax.rsqrt(var + eps)).astype(jnp.bfloat16)       # norm(x).to(bf16)

    # Modulation: e0 = mod[0] + e, e1 = mod[1] + e  (per-batch row, bcast over L)
    ef = e_ref[0].astype(jnp.float32)                              # (1, C)
    mod = mod_ref[0].astype(jnp.float32)                           # (2, C)
    scale = 1.0 + (mod[1:2, :] + ef)                               # (1, C)
    shift = mod[0:1, :] + ef                                       # (1, C)

    # Match torch's sequential in-place bf16 ops: (*=) then (+=), rounding between.
    ym = (y.astype(jnp.float32) * scale).astype(jnp.bfloat16)
    ym = (ym.astype(jnp.float32) + shift).astype(jnp.bfloat16)

    # Head linear: bf16 x bf16 -> f32 accumulate on the MXU, add bias, store bf16.
    acc = jnp.dot(ym, w_ref[...], preferred_element_type=jnp.float32)  # (tile_L, O)
    acc = acc + b_ref[...]                                             # (1, O) bcast
    o_ref[0] = acc.astype(o_ref.dtype)


def head_forward(x, e, modulation, weight, bias, *, eps=1e-6, tile_rows=256):
    """x: [B, L, C], e: [B, C], modulation: [1, 2, C],
    weight: [O, C] (torch Linear layout), bias: [O] -> [B, L, O] bf16."""
    B, L, C = x.shape
    O = weight.shape[0]

    # Hoisted layout / dtype plumbing (done once, outside the kernel).
    wt = jnp.transpose(weight).astype(jnp.bfloat16)         # (C, O)
    b2 = bias.reshape(1, O).astype(jnp.float32)             # (1, O)
    mod3 = modulation.reshape(1, 2, C).astype(jnp.float32)  # (1, 2, C)
    e3 = e.reshape(B, 1, C).astype(jnp.float32)             # (B, 1, C)

    # Row tile: large for streaming efficiency, sublane-aligned (mult. of 16
    # for bf16 intermediates), shrunk for small L or very large C so the
    # double-buffered x tile stays well inside VMEM.
    max_tile_bytes = 8 * 1024 * 1024
    tl_cap = max(16, (max_tile_bytes // max(C * 4, 1)) // 16 * 16)
    tl = max(16, min(_round_up(tile_rows, 16), tl_cap, _round_up(L, 16)))
    Lp = _round_up(L, tl)
    xp = x if Lp == L else jnp.pad(x, ((0, 0), (0, Lp - L), (0, 0)))

    grid = (B, Lp // tl)

    out = pl.pallas_call(
        functools.partial(_head_kernel, eps=float(eps), inv_c=1.0 / C),
        out_shape=jax.ShapeDtypeStruct((B, Lp, O), jnp.bfloat16),
        grid_spec=pltpu.PrefetchScalarGridSpec(
            num_scalar_prefetch=0,
            grid=grid,
            in_specs=[
                pl.BlockSpec((1, tl, C), lambda b_i, l_i: (b_i, l_i, 0)),  # x
                pl.BlockSpec((1, 1, C), lambda b_i, l_i: (b_i, 0, 0)),     # e
                pl.BlockSpec((1, 2, C), lambda b_i, l_i: (0, 0, 0)),       # modulation (resident)
                pl.BlockSpec((C, O), lambda b_i, l_i: (0, 0)),             # weight (resident)
                pl.BlockSpec((1, O), lambda b_i, l_i: (0, 0)),             # bias (resident)
            ],
            out_specs=pl.BlockSpec((1, tl, O), lambda b_i, l_i: (b_i, l_i, 0)),
        ),
        compiler_params=pltpu.CompilerParams(
            dimension_semantics=("parallel", "parallel"),
            vmem_limit_bytes=48 * 1024 * 1024,
        ),
    )(xp, e3, mod3, wt, b2)

    return out[:, :L, :]


def _reference(x, e, modulation, weight, bias, eps=1e-6):
    me = modulation + e[:, None, :]                          # (B, 2, C)
    e0 = me[:, 0:1, :]
    e1 = me[:, 1:2, :]
    xf = x.astype(jnp.float32)
    mean = jnp.mean(xf, axis=-1, keepdims=True)
    var = jnp.mean((xf - mean) ** 2, axis=-1, keepdims=True)
    y = ((xf - mean) * jax.lax.rsqrt(var + eps)).astype(jnp.bfloat16)
    y = (y.astype(jnp.float32) * (1.0 + e1)).astype(jnp.bfloat16)
    y = (y.astype(jnp.float32) + e0).astype(jnp.bfloat16)
    out = jnp.einsum("blc,co->blo", y, weight.T.astype(jnp.bfloat16),
                     preferred_element_type=jnp.float32)
    out = out + bias.astype(jnp.float32)
    return out.astype(jnp.bfloat16)


if __name__ == "__main__":
    key = jax.random.PRNGKey(0)
    k1, k2, k3, k4, k5 = jax.random.split(key, 5)

    # Small shapes consistent with Head: dim=32, out_dim=4, patch_size=(1,2,2).
    dim, out_dim, patch_size = 32, 4, (1, 2, 2)
    out_features = math.prod(patch_size) * out_dim           # 16
    B, L = 2, 8
    eps = 1e-6

    x = jax.random.normal(k1, (B, L, dim), dtype=jnp.float32)
    e = jax.random.normal(k2, (B, dim), dtype=jnp.float32)
    modulation = jax.random.normal(k3, (1, 2, dim), dtype=jnp.float32) / dim ** 0.5
    weight = jax.random.normal(k4, (out_features, dim), dtype=jnp.float32) / dim ** 0.5
    bias = jax.random.normal(k5, (out_features,), dtype=jnp.float32) * 0.01

    out = head_forward(x, e, modulation, weight, bias, eps=eps)
    jax.block_until_ready(out)

    ref = _reference(x, e, modulation, weight, bias, eps=eps)
    assert out.shape == (B, L, out_features)
    assert out.dtype == jnp.bfloat16
    assert jnp.allclose(out.astype(jnp.float32), ref.astype(jnp.float32),
                        atol=2e-2, rtol=2e-2)
    print("KERNEL_OK")
</pallas_src>

<mosaic_0001>
module attributes {stable_mosaic.version = 11 : i64} {
  func.func @_head_kernel(%arg0: i32, %arg1: i32, %arg2: memref<1x16x32xf32, #tpu.memory_space<vmem>>, %arg3: memref<1x1x32xf32, #tpu.memory_space<vmem>>, %arg4: memref<1x2x32xf32, #tpu.memory_space<vmem>>, %arg5: memref<32x16xbf16, #tpu.memory_space<vmem>>, %arg6: memref<1x16xf32, #tpu.memory_space<vmem>>, %arg7: memref<1x16x16xbf16, #tpu.memory_space<vmem>>) attributes {dimension_semantics = [#tpu.dimension_semantics<parallel>, #tpu.dimension_semantics<parallel>], iteration_bounds = array<i64: 2, 1>, scalar_prefetch = 0 : i64, scratch_operands = 0 : i64, tpu.core_type = #tpu.core_type<tc>, window_params = [{transform_indices = @transform_0, window_bounds = array<i64: 1, 16, 32>}, {transform_indices = @transform_1, window_bounds = array<i64: 1, 1, 32>}, {pipeline_mode = #tpu.pipeline_mode<synchronous>, transform_indices = @transform_2, window_bounds = array<i64: 1, 2, 32>}, {pipeline_mode = #tpu.pipeline_mode<synchronous>, transform_indices = @transform_3, window_bounds = array<i64: 32, 16>}, {pipeline_mode = #tpu.pipeline_mode<synchronous>, transform_indices = @transform_4, window_bounds = array<i64: 1, 16>}, {transform_indices = @transform_5, window_bounds = array<i64: 1, 16, 16>}]} {
    %c0 = arith.constant 0 : index
    %c0_0 = arith.constant 0 : index
    %c0_1 = arith.constant 0 : index
    %0 = vector.load %arg2[%c0, %c0_0, %c0_1] : memref<1x16x32xf32, #tpu.memory_space<vmem>>, vector<1x16x32xf32>
    %1 = vector.shape_cast %0 : vector<1x16x32xf32> to vector<16x32xf32>
    %cst = arith.constant dense<0.000000e+00> : vector<16xf32>
    %2 = vector.multi_reduction <add>, %1, %cst [1] : vector<16x32xf32> to vector<16xf32>
    %3 = vector.shape_cast %2 : vector<16xf32> to vector<16x1xf32>
    %cst_2 = arith.constant 3.125000e-02 : f32
    %4 = vector.broadcast %cst_2 : f32 to vector<16x1xf32>
    %5 = arith.mulf %3, %4 : vector<16x1xf32>
    %6 = vector.broadcast %5 : vector<16x1xf32> to vector<16x32xf32>
    %7 = arith.subf %1, %6 : vector<16x32xf32>
    %8 = arith.mulf %7, %7 : vector<16x32xf32>
    %cst_3 = arith.constant dense<0.000000e+00> : vector<16xf32>
    %9 = vector.multi_reduction <add>, %8, %cst_3 [1] : vector<16x32xf32> to vector<16xf32>
    %10 = vector.shape_cast %9 : vector<16xf32> to vector<16x1xf32>
    %cst_4 = arith.constant 3.125000e-02 : f32
    %11 = vector.broadcast %cst_4 : f32 to vector<16x1xf32>
    %12 = arith.mulf %10, %11 : vector<16x1xf32>
    %cst_5 = arith.constant 9.99999997E-7 : f32
    %13 = vector.broadcast %cst_5 : f32 to vector<16x1xf32>
    %14 = arith.addf %12, %13 : vector<16x1xf32>
    %15 = math.rsqrt %14 : vector<16x1xf32>
    %16 = vector.broadcast %15 : vector<16x1xf32> to vector<16x32xf32>
    %17 = arith.mulf %7, %16 : vector<16x32xf32>
    %18 = arith.truncf %17 : vector<16x32xf32> to vector<16x32xbf16>
    %c0_6 = arith.constant 0 : index
    %c0_7 = arith.constant 0 : index
    %c0_8 = arith.constant 0 : index
    %19 = vector.load %arg3[%c0_6, %c0_7, %c0_8] : memref<1x1x32xf32, #tpu.memory_space<vmem>>, vector<1x1x32xf32>
    %20 = vector.shape_cast %19 : vector<1x1x32xf32> to vector<1x32xf32>
    %c0_9 = arith.constant 0 : index
    %c0_10 = arith.constant 0 : index
    %c0_11 = arith.constant 0 : index
    %21 = vector.load %arg4[%c0_9, %c0_10, %c0_11] : memref<1x2x32xf32, #tpu.memory_space<vmem>>, vector<1x2x32xf32>
    %22 = vector.shape_cast %21 : vector<1x2x32xf32> to vector<2x32xf32>
    %23 = vector.extract_strided_slice %22 {offsets = [1, 0], sizes = [1, 32], strides = [1, 1]} : vector<2x32xf32> to vector<1x32xf32>
    %24 = arith.addf %23, %20 : vector<1x32xf32>
    %cst_12 = arith.constant 1.000000e+00 : f32
    %25 = vector.broadcast %cst_12 : f32 to vector<1x32xf32>
    %26 = arith.addf %25, %24 : vector<1x32xf32>
    %27 = vector.extract_strided_slice %22 {offsets = [0, 0], sizes = [1, 32], strides = [1, 1]} : vector<2x32xf32> to vector<1x32xf32>
    %28 = arith.addf %27, %20 : vector<1x32xf32>
    %29 = arith.extf %18 : vector<16x32xbf16> to vector<16x32xf32>
    %30 = vector.broadcast %26 : vector<1x32xf32> to vector<16x32xf32>
    %31 = arith.mulf %29, %30 : vector<16x32xf32>
    %32 = arith.truncf %31 : vector<16x32xf32> to vector<16x32xbf16>
    %33 = arith.extf %32 : vector<16x32xbf16> to vector<16x32xf32>
    %34 = vector.broadcast %28 : vector<1x32xf32> to vector<16x32xf32>
    %35 = arith.addf %33, %34 : vector<16x32xf32>
    %36 = arith.truncf %35 : vector<16x32xf32> to vector<16x32xbf16>
    %c0_13 = arith.constant 0 : index
    %c0_14 = arith.constant 0 : index
    %37 = vector.load %arg5[%c0_13, %c0_14] : memref<32x16xbf16, #tpu.memory_space<vmem>>, vector<32x16xbf16>
    %cst_15 = arith.constant dense<0.000000e+00> : vector<16x16xf32>
    %38 = tpu.matmul %36, %37, %cst_15 {dimension_numbers = #tpu.dot_dimension_numbers<[1], [0], [0], [1], [0, 0, 1, 1], [], []>} : vector<16x32xbf16>, vector<32x16xbf16>, vector<16x16xf32> -> vector<16x16xf32>
    %c0_16 = arith.constant 0 : index
    %c0_17 = arith.constant 0 : index
    %39 = vector.load %arg6[%c0_16, %c0_17] : memref<1x16xf32, #tpu.memory_space<vmem>>, vector<1x16xf32>
    %40 = vector.broadcast %39 : vector<1x16xf32> to vector<16x16xf32>
    %41 = arith.addf %38, %40 : vector<16x16xf32>
    %42 = arith.truncf %41 : vector<16x16xf32> to vector<16x16xbf16>
    %c0_18 = arith.constant 0 : index
    %c0_19 = arith.constant 0 : index
    %c0_20 = arith.constant 0 : index
    %43 = vector.load %arg7[%c0_18, %c0_19, %c0_20] : memref<1x16x16xbf16, #tpu.memory_space<vmem>>, vector<1x16x16xbf16>
    %44 = vector.shape_cast %43 : vector<1x16x16xbf16> to vector<16x16xbf16>
    %45 = vector.shape_cast %42 : vector<16x16xbf16> to vector<1x16x16xbf16>
    tpu.vector_store %arg7[%c0_18, %c0_19, %c0_20], %45 {strides = array<i32>} : memref<1x16x16xbf16, #tpu.memory_space<vmem>>, vector<1x16x16xbf16>,
    return
  }
  func.func @transform_0(%arg0: i32, %arg1: i32) -> (i32, i32, i32) {
    %c0_i32 = arith.constant 0 : i32
    %c0_i32_0 = arith.constant 0 : i32
    return %arg0, %arg1, %c0_i32 : i32, i32, i32
  }
  func.func @transform_1(%arg0: i32, %arg1: i32) -> (i32, i32, i32) {
    %c0_i32 = arith.constant 0 : i32
    %c0_i32_0 = arith.constant 0 : i32
    %c0_i32_1 = arith.constant 0 : i32
    return %arg0, %c0_i32, %c0_i32_0 : i32, i32, i32
  }
  func.func @transform_2(%arg0: i32, %arg1: i32) -> (i32, i32, i32) {
    %c0_i32 = arith.constant 0 : i32
    %c0_i32_0 = arith.constant 0 : i32
    %c0_i32_1 = arith.constant 0 : i32
    %c0_i32_2 = arith.constant 0 : i32
    return %c0_i32, %c0_i32_0, %c0_i32_1 : i32, i32, i32
  }
  func.func @transform_3(%arg0: i32, %arg1: i32) -> (i32, i32) {
    %c0_i32 = arith.constant 0 : i32
    %c0_i32_0 = arith.constant 0 : i32
    %c0_i32_1 = arith.constant 0 : i32
    return %c0_i32, %c0_i32_0 : i32, i32
  }
  func.func @transform_4(%arg0: i32, %arg1: i32) -> (i32, i32) {
    %c0_i32 = arith.constant 0 : i32
    %c0_i32_0 = arith.constant 0 : i32
    %c0_i32_1 = arith.constant 0 : i32
    return %c0_i32, %c0_i32_0 : i32, i32
  }
  func.func @transform_5(%arg0: i32, %arg1: i32) -> (i32, i32, i32) {
    %c0_i32 = arith.constant 0 : i32
    %c0_i32_0 = arith.constant 0 : i32
    return %arg0, %arg1, %c0_i32 : i32, i32, i32
  }
}

</mosaic_0001>

<bundles_post_ra>
// kernel: tpu_custom_call.1
= control target key start
LH: loop header
LB: loop body
LE: loop exit
PB: predicated region body
PF: predicated region fallthrough
CT: control target
= control target key end

     0   :  { %10 = vsyncpa [#allocation3], 0  ;;  %s987_s0 = inlined_call_operand.hbm [shape: f32[2,16,32], index: 0, kind: input, shape index: {}]   ;;  %s988_s1 = inlined_call_operand.vmem [shape: f32[2,1,32], index: 1, kind: input, shape index: {}]   ;;  %s989_s2 = inlined_call_operand.vmem [shape: f32[1,2,32], index: 2, kind: input, shape index: {}]   ;;  %s990_s3 = inlined_call_operand.vmem [shape: bf16[32,16], index: 3, kind: input, shape index: {}]   ;;  %s991_s4 = inlined_call_operand.vmem [shape: f32[1,16], index: 4, kind: input, shape index: {}]   ;;  %s992_s5 = inlined_call_operand.hbm [shape: bf16[2,16,16], index: 5, kind: output, shape index: {}]  }
   0x1   :  { %12 = vsyncpa [#allocation3 + $0x1], 0 }
   0x2   :  { %13 = vsyncpa [#allocation4], 0 }
   0x3   :  { %15 = vsyncpa [#allocation4 + $0x1], 0  ;;  %s789_s18 = smov 0   ;;  %s791_s19 = smov 0  }
   0x4   :  { %s793_s20 = smov 0   ;;  %s795_s21 = smov 0  }
   0x5   :  { %s797_s22 = smov 0   ;;  %s799_s23 = smov 0  }
   0x6 LB: > { %s527_s24 = sadd.s32 4294967295, %s749_s23   ;;  %s528_s25 = sadd.s32 4294967294, %s749_s23   ;;  %s749_s23 = sphi %s799_s23, %s21_s23   ;;  %s745_s22 = sphi %s797_s22, %s1007_s22   ;;  %s741_s21 = sphi %s795_s21, %s1006_s21   ;;  %s737_s20 = sphi %s793_s20, %s1005_s20   ;;  %s733_s19 = sphi %s791_s19, %s1004_s19   ;;  %s729_s18 = sphi %s789_s18, %s1003_s18  }
   0x7   : > { %s33_s26 = sadd.s32 1, %s745_s22  ;;  %s42_s27 = sadd.s32 1, %s737_s20 }
   0x8   : > { %p35_p0 = scmp.ge.s32.totalorder %s33_s26, 2  ;;  %p49_p1 = scmp.ne.s32.totalorder %s737_s20, %s733_s19 }
   0x9   : > { %p50_p2 = scmp.eq.s32.totalorder %s749_s23, 0  ;;  %p55_p3 = scmp.ne.s32.totalorder %s733_s19, %s729_s18 }
   0xa   : > { %s1009_s26 = smov (%p35_p0, %s33_s26), 0  ;;  %p56_p5 = scmp.eq.s32.totalorder %s527_s24, 0 }
   0xb   : > { %p830_p4 = por %p50_p2, %p49_p1  ;;  %s37_s29 = ssub.s32 %s745_s22, %s1009_s26 }
   0xc   : > { %p170_p6 = scmp.eq.s32.totalorder %s527_s24, 1  ;;  %p40_p7 = scmp.eq.s32.totalorder %s37_s29, 0 }
   0xd   : > { %p836_p8 = por %p56_p5, %p55_p3  ;;  %p176_p10 = scmp.eq.s32.totalorder %s528_s25, 1 }
   0xe   : > { %p840_p9 = por %p170_p6, %p49_p1  ;;  %p575_p13 = scmp.lt.s32.totalorder %s749_s23, 2 }
   0xf   : > { %s845_s7 = scalar_select %p40_p7, %s737_s20, %s42_s27  }
  0x10   : > { %s996_s6 = scalar_select %p840_p9, 1, 0 }
  0x11   : > { %p847_p11 = por %p176_p10, %p55_p3  ;;  %s205_s9 = sand.u32 1, %s737_s20  }
  0x12   : > { %s531_s10 = sshll.u32 %s205_s9, 4  ;;  %s548_s11 = sshll.u32 %s745_s22, 8 }
  0x13   : > { %s997_s8 = scalar_select %p847_p11, 1, 0 }
  0x14   : > { %s858_s14 = scalar_lea.hbm %s987_s0, %s548_s11  ;;  %s209_s15 = scalar_lea.vmem [#allocation2], %s531_s10 }
  0x15   : > { %s218_s16 = sshll.u32 %s209_s15, 4  ;;  %p864_p0 = pnand %p575_p13, %p830_p4  ;;  %s860_s16 = int_to_ptr.vmem [resolvable:$true] %s218_s16 }
  0x16   : > { %s869_s24 = scalar_lea.sflag [#allocation3], %s205_s9  ;;  %s637_s25 = scalar_lea.hbm %s858_s14, 256 }
  0x17   : > { %p638_p2 = scmp.ne.s32.totalorder %s858_s14, %s637_s25  ;;  %p639_p3 = pneg %p864_p0 }
  0x18   : > { %s642_s28 = scalar_lea.hbm %s987_s0, 512  ;;  %p643_p4 = scmp.lt.u32.totalorder %s858_s14, %s987_s0 }
  0x19   : > { %p640_p5 = pnand %p639_p3, %p638_p2  ;;  %p644_p7 = scmp.lt.u32.totalorder %s642_s28, %s637_s25 }
  0x1a   : > { %p646_p13 = scmp.lt.u32.totalorder %s637_s25, %s858_s14 }
  0x1b   : > { %p641_p6 = pneg %p640_p5  ;;  %p645_p10 = por %p644_p7, %p643_p4 }
  0x1d   : > { %p647_p12 = por %p646_p13, %p645_p10 }
  0x1f   : > { %p648_p1 = pnand %p647_p12, %p641_p6 }
  0x21   : > { %651 = shalt.err (!%p648_p1)
}
  0x22   : > { %s652_s9 = scalar_lea.vmem %s860_s16, 256  ;;  %s751_s12 = smov [#allocation2]  }
  0x23   : > { %p653_p2 = scmp.ne.s32.totalorder %s860_s16, %s652_s9  ;;  %s657_s13 = sshll.u32 %s751_s12, 4  ;;  %s658_s13 = int_to_ptr.vmem [resolvable:$false] %s657_s13 }
  0x24   : > { %s659_s15 = scalar_lea.vmem %s658_s13, 512  ;;  %p660_p9 = scmp.lt.s32.totalorder %s860_s16, %s658_s13 }
  0x25   : > { %p655_p5 = pnand %p653_p2, %p639_p3  ;;  %p661_p4 = scmp.lt.s32.totalorder %s659_s15, %s652_s9 }
  0x27   : > { %p656_p11 = pneg %p655_p5  ;;  %p662_p7 = por %p661_p4, %p660_p9 }
  0x29   : > { %p663_p10 = pnand %p662_p7, %p656_p11 }
  0x2b   : > { %666 = shalt.err (!%p663_p10)
}
  0x2c   : > { %s752_s25 = smov 128   ;;  %s753_s27 = smov 8  }
  0x2d   : > { %570 = dma.hbm_to_vmem [thread:$0]  (!%p864_p0), %s858_s14, 256, %s860_s16, %s869_s24, %s752_s25, %s752_s25, %s753_s27  }
  0x2e   : > { %p232_p12 = scmp.lt.s32.totalorder %s749_s23, 3  ;;  %p999_p1 = scmp.ge.s32.totalorder %s749_s23, 1 }
  0x30   : > { %p233_p3 = pnand %p999_p1, %p232_p12 }
  0x31   : > { %s901_s29 = sand.u32 (!%p233_p3), 1, %s733_s19  }
  0x32   : > { %236 = sbr.rel (%p233_p3) target bundleno = 619 (0x26b), region = 40  ;;  %s535_s28 = sshll.u32 (!%p233_p3), %s901_s29, 4 }
  0x33   : > { %s239_s10 = scalar_lea.sflag (!%p233_p3), [#allocation3], %s901_s29  ;;  %s242_s11 = scalar_lea.vmem (!%p233_p3), [#allocation2], %s535_s28 }
  0x39   : > { %720 = dma.done.wait (%p836_p8), %s239_s10, 256  }
  0x3a   : > { %722 = vsyncadd (%p836_p8), %s239_s10, 4294967040  ;;  %vm280_vm0 = vcmask 261120   ;;  %v278_v0 = vld [vmem:[%s242_s11] sm:$0xff]  ;;  %v279_v1 = vld [vmem:[%s242_s11 + $0x8] sm:$0xff]  ;;  %v754_v15 = vmov 0.0   ;;  %vm755_vm1 = vmmov 0   ;;  %v311_v17 = vlaneseq }
  0x3b   : > { %v281_v2 = vsel %vm280_vm0, %v278_v0, 0.0  ;;  %v284_v3 = vsel %vm280_vm0, %v279_v1, 0.0  ;;  %v631_v14 = vld [vmem:[%s990_s3] sm:$0xff]   ;;  %555 = vmatprep.subr.bf16.mxu0 %v754_v15  ;;  %559 = vmatprep.mubr.msk.bf16.mxu0 %vm755_vm1, %v754_v15  ;;  %v632_v16 = vld [vmem:[%s990_s3 + $0x8] sm:$0xff]   ;;  %p273_p8 = scmp.lt.s32.totalorder %s741_s21, 1  ;;  %s536_s27 = sshll.u32 %s901_s29, 3 }
  0x3c   : > { %282 = vadd.xlane.f32.xlu0 %v281_v2  ;;  %556 = vmatpush3.bf16.msra.mxu0 %v631_v14  ;;  %v312_v20 = vshrl.u32 %v311_v17, 7  ;;  %v309_v28 = vld [vmem:[%s989_s2] sm:$0x3]  ;;  %s271_s11 = scalar_lea.vmem [#allocation5], %s536_s27  ;;  %s551_s14 = sshll.u32 %s741_s21, 7  ;;  %vm412_vm2 = vcmask 125952  }
  0x3d   : > { %557 = vmatprep.subr.bf16.mxu0 %v754_v15  ;;  %s274_s24 = scalar_select %p273_p8, %s741_s21, 1  ;;  %v537_v50 = vld [vmem:[%s991_s4] ss:$0 sm:$0xff] }
  0x3e   : > { %v313_v24 = vsub.s32 0, %v312_v20  ;;  %v323_v32 = vsub.s32 1, %v312_v20  ;;  %s431_s30 = sshll.u32 %s271_s11, 4  ;;  %s416_s9 = scalar_lea.sflag [#allocation4], %s901_s29  ;;  %s938_s30 = int_to_ptr.vmem [resolvable:$true] %s431_s30 }
  0x3f   : > { %s275_s13 = scalar_lea.vmem %s988_s1, %s274_s24  ;;  %s936_s24 = scalar_lea.hbm %s992_s5, %s551_s14 }
  0x40   : > { %285 = vadd.xlane.f32.xlu0 %v284_v3  ;;  %558 = vmatpush3.bf16.msra.mxu0 %v632_v16  ;;  %v308_v26 = vld [vmem:[%s275_s13] sm:$0x1]  ;;  %s667_s21 = scalar_lea.vmem %s938_s30, 128  ;;  %p1000_p11 = scmp.ne.s32.totalorder %s996_s6, 0 }
  0x41   : > { %v314_v27 = vrot.slane %v308_v26, %v313_v24  ;;  %v318_v40 = vadd.f32 %v309_v28, %v308_v26  ;;  %p668_p9 = scmp.ne.s32.totalorder %s938_s30, %s667_s21  ;;  %s756_s12 = smov [#allocation5]  }
  0x42   : > { %s671_s13 = sshll.u32 %s756_s12, 4  ;;  %s672_s13 = int_to_ptr.vmem [resolvable:$false] %s671_s13 }
  0x43   : > { %v316_v29 = vadd.f32 %v314_v27, %v309_v28  ;;  %v333_v44 = vrot.slane %v318_v40, %v313_v24  ;;  %p669_p0 = pnand %p668_p9, %p1000_p11  ;;  %s673_s15 = scalar_lea.vmem %s672_s13, 256 }
  0x44   : > { %p674_p13 = scmp.lt.s32.totalorder %s938_s30, %s672_s13  ;;  %p675_p2 = scmp.lt.s32.totalorder %s673_s15, %s667_s21 }
  0x45   : > { %v317_v31 = vadd.f32 1.0, %v316_v29  ;;  %p670_p6 = pneg %p669_p0 }
  0x46   : > { %p676_p5 = por %p675_p2, %p674_p13 }
  0x47   : > { %v324_v37 = vrot.slane %v317_v31, %v323_v32 }
  0x48   : > { %p677_p4 = pnand %p676_p5, %p670_p6 }
  0xc9   : > { %v283_v4 = vpop.xlane.xlu0 %282 }
  0xca   : > { %v287_v5 = vmul.f32 0.03125, %v283_v4 }
  0xcc   : > { %v289_v6 = vsub.f32 %v278_v0, %v287_v5 }
  0xcd   : > { %v286_v7 = vpop.xlane.xlu0 %285 }
  0xce   : > { %v288_v8 = vmul.f32 0.03125, %v286_v7  ;;  %v291_v9 = vmul.f32 %v289_v6, %v289_v6 }
  0xd0   : > { %v290_v10 = vsub.f32 %v279_v1, %v288_v8  ;;  %v293_v11 = vsel %vm280_vm0, %v291_v9, 0.0 }
  0xd1   : > { %294 = vadd.xlane.f32.xlu1 %v293_v11 }
  0xd2   : > { %v292_v12 = vmul.f32 %v290_v10, %v290_v10 }
  0xd4   : > { %v296_v13 = vsel %vm280_vm0, %v292_v12, 0.0 }
  0xd5   : > { %297 = vadd.xlane.f32.xlu1 %v296_v13 }
 0x15e   : > { %v295_v18 = vpop.xlane.xlu1 %294 }
 0x15f   : > { %v299_v19 = vmul.f32 0.03125, %v295_v18 }
 0x161   : > { %v301_v21 = vadd.f32 1e-06, %v299_v19 }
 0x162   : > { %v298_v22 = vpop.xlane.xlu1 %297 }
 0x163   : > { %v300_v23 = vmul.f32 0.03125, %v298_v22  ;;  %633 = vrsqrt.f32 %v301_v21 }
 0x165   : > { %v302_v25 = vadd.f32 1e-06, %v300_v23 }
 0x167   : > { %635 = vrsqrt.f32 %v302_v25 }
 0x16d   : > { %v634_v30 = vpop.eup %633 }
 0x16e   : > { %v305_v34 = vmul.f32 %v634_v30, %v289_v6 }
 0x171   : > { %v636_v33 = vpop.eup %635 }
 0x172   : > { %v306_v35 = vmul.f32 %v636_v33, %v290_v10 }
 0x174   : > { %v307_v36 = vpack.c.bf16 %v306_v35, %v305_v34 }
 0x176   : > { %v319_v38 = vunpack.c.l.bf16 %v307_v36  ;;  %v320_v39 = vunpack.c.h.bf16 %v307_v36 }
 0x178   : > { %v325_v41 = vmul.f32 %v324_v37, %v319_v38  ;;  %v326_v42 = vmul.f32 %v324_v37, %v320_v39 }
 0x17a   : > { %v327_v43 = vpack.c.bf16 %v326_v42, %v325_v41 }
 0x17c   : > { %v328_v45 = vunpack.c.l.bf16 %v327_v43  ;;  %v329_v46 = vunpack.c.h.bf16 %v327_v43 }
 0x17e   : > { %v334_v47 = vadd.f32 %v333_v44, %v328_v45  ;;  %v335_v48 = vadd.f32 %v333_v44, %v329_v46 }
 0x180   : > { %v336_v49 = vpack.c.bf16 %v335_v48, %v334_v47 }
 0x182   : > { %560 = vmatmul.mubr.msk.bf16.vlgmr.msra.gmra.mrb[0].mxu0 %vm280_vm0, %v336_v49 }
 0x255   : > { %v397_v51 = vpop.f32.mrb[0].mxu0 }
 0x256   : > { %v398_v52 = vadd.f32 %v537_v50, %v397_v51  ;;  %v561_v53 = vpop.f32.mrb[1].mxu0 }
 0x257   : > { %v400_v54 = vpop.f32.mrb[2].mxu0 }
 0x258   : > { %v549_v55 = vpack.c.bf16 %v398_v52, %v398_v52  ;;  %v401_v56 = vadd.f32 %v537_v50, %v400_v54  ;;  %v562_v57 = vpop.f32.mrb[3].mxu0 }
 0x25a   : > { %413 = vst.msk [vmem:[%s271_s11] sm:$0xf] %vm412_vm2, %v549_v55  ;;  %v550_v58 = vpack.c.bf16 %v401_v56, %v401_v56 }
 0x25c   : > { %414 = vst.msk [vmem:[%s271_s11 + $0x4] sm:$0xf] %vm412_vm2, %v550_v58 }
 0x25d   : > { %680 = shalt.err (!%p677_p4)
}
 0x25e   : > { %s681_s25 = scalar_lea.hbm %s936_s24, 128  ;;  %s685_s10 = scalar_lea.hbm %s992_s5, 256 }
 0x25f   : > { %p682_p7 = scmp.ne.s32.totalorder %s936_s24, %s681_s25  ;;  %p686_p1 = scmp.lt.u32.totalorder %s936_s24, %s992_s5 }
 0x260   : > { %p687_p3 = scmp.lt.u32.totalorder %s685_s10, %s681_s25  ;;  %p689_p9 = scmp.lt.u32.totalorder %s681_s25, %s936_s24 }
 0x261   : > { %p683_p10 = pnand %p682_p7, %p1000_p11 }
 0x262   : > { %p688_p8 = por %p687_p3, %p686_p1 }
 0x263   : > { %p684_p12 = pneg %p683_p10 }
 0x264   : > { %p690_p0 = por %p689_p9, %p688_p8 }
 0x266   : > { %p691_p6 = pnand %p690_p0, %p684_p12 }
 0x268   : > { %694 = shalt.err (!%p691_p6)
}
 0x269   : > { %s757_s16 = smov 64   ;;  %s758_s17 = smov 4  }
 0x26a   : > { %565 = dma.vmem_to_hbm [thread:$0]  (%p1000_p11), %s938_s30, 128, %s936_s24, %s416_s9, %s757_s16, %s757_s16, %s758_s17  }
 0x26b PF: > { %s446_s21 = sand.u32 1, %s729_s18   ;;  %p1001_p13 = scmp.ne.s32.totalorder %s997_s8, 0 }
 0x26c   : > { %p1002_p2 = scmp.ge.s32.totalorder %s749_s23, 2  ;;  %s447_s12 = scalar_lea.sflag [#allocation4], %s446_s21 }
 0x26e   : > { %p572_p5 = pnand %p1002_p2, %p1001_p13 }
 0x270   : > { %724 = dma.done.wait (!%p572_p5), %s447_s12, 128  }
 0x271   : > { %726 = vsyncadd (!%p572_p5), %s447_s12, 4294967168  ;;  %s21_s23 = sadd.s32 1, %s749_s23   ;;  %s1003_s18 = smov %s733_s19 }
 0x272   : > { %p18_p4 = scmp.ge.s32.totalorder %s21_s23, 4   ;;  %s1004_s19 = smov %s737_s20 }
 0x273   : > { %s1005_s20 = smov %s845_s7  ;;  %s1006_s21 = smov %s745_s22 }
 0x274   : > { %s1007_s22 = smov %s1009_s26  ;;  %20 = sbr.rel (!%p18_p4) target bundleno = 6 (0x6), region = 88 }
 0x27b   :  { %452 = vsyncpa [#allocation3], 1 }
 0x27c   :  { %454 = vsyncpa [#allocation3 + $0x1], 1 }
 0x27d   :  { %455 = vsyncpa [#allocation4], 1 }
 0x27e   :  { %457 = vsyncpa [#allocation4 + $0x1], 1 }

</bundles_post_ra>
